<compile_context>
chip_gen: v6e
topology: v6e:2x2x1
jax: 0.10.0
libtpu: 0.0.40
codegen_flags: <defaults>
</compile_context>

<pallas_src>
import jax
import jax.numpy as jnp
from jax.experimental import pallas as pl
from jax.experimental.pallas import tpu as pltpu

# ----------------------- model hyper-parameters (small) ----------------------
B = 2        # batch
S = 8        # sequence length
BS = B * S   # flattened rows
H = 32       # hidden size
F = 64       # FFN intermediate size
C = 16       # num labels (16 MBTI types)
VOCAB = 64   # vocab size
LN_EPS = 1e-5

# ---------------- packed parameter slab layout (f32, [SLAB_R, 128]) ----------
# Row offsets are multiples of 8 (sublane-tile aligned); columns start at lane
# 0, so every in-kernel slice is tile-friendly.  Token and position embedding
# tables are adjacent so a single combined [VOCAB+S, H] slice fuses the gather
# and the positional add into one matmul.
SLAB_L = 128
R_WQKV = 0            # [H, 3H]   fused Q/K/V projection
R_WO   = 32           # [H, H]
R_W1   = 64           # [H, F]
R_W2   = 96           # [F, H]
R_WC   = 160          # [H, C]   (columns C..127 stay zero -> wide-lane head)
R_LN1G = 192          # [1, H]
R_LN1B = 200          # [1, H]
R_LN2G = 208          # [1, H]
R_LN2B = 216          # [1, H]
R_BC   = 224          # [1, C]   (columns C..127 stay zero)
R_TOK  = 232          # [VOCAB, H] token embedding table
R_POS  = 296          # [S, H]     position embedding table (adjacent to R_TOK)
SLAB_R = 304

# ---------------- packed integer operand slab (int32, [ISLAB_R, 128]) --------
ISLAB_R  = 24
COL_ID   = 0          # column 0, rows 0..BS-1 : token ids (flattened b*S+s)
COL_MASK = 1          # column 1, rows 0..BS-1 : attention mask (query/pool side)
COL_LAB  = 2          # column 2, rows 0..B-1  : labels
COL_POS  = 3          # column 3, rows 0..BS-1 : position index s
COL_BAT  = 4          # column 4, rows 0..BS-1 : batch index b
ROW_KMASK = 16        # row 16, lanes 0..BS-1  : attention mask (key/lane side)
ROW_KBAT  = 17        # row 17, lanes 0..BS-1  : batch index (key/lane side)

OUT_R = 8             # lane+sublane-dense output slab: exactly one (8,128) vreg
OUT_L = 128


def _layer_norm(x, gamma, beta):
    # x: [N, H]; gamma/beta: [1, H].  Two-pass variance (matches the reference
    # exactly; avoids E[x^2]-mu^2 cancellation with trained weights).
    mu = jnp.mean(x, axis=-1, keepdims=True)
    xc = x - mu
    var = jnp.mean(xc * xc, axis=-1, keepdims=True)
    return xc * jax.lax.rsqrt(var + LN_EPS) * gamma + beta


def _model_kernel(islab_ref, w_ref, out_ref):
    f32 = jnp.float32

    # ---- unpack the parameter slab with static, tile-aligned ref slices ----
    wqkv = w_ref[R_WQKV:R_WQKV + H, 0:3 * H]            # [H, 3H]
    wo   = w_ref[R_WO:R_WO + H, 0:H]                    # [H, H]
    w1   = w_ref[R_W1:R_W1 + H, 0:F]                    # [H, F]
    w2   = w_ref[R_W2:R_W2 + F, 0:H]                    # [F, H]
    wc_w = w_ref[R_WC:R_WC + H, 0:OUT_L]                # [H, 128] (cols>=C zero)
    g1   = w_ref[R_LN1G:R_LN1G + 1, 0:H]                # [1, H]
    b1   = w_ref[R_LN1B:R_LN1B + 1, 0:H]
    g2   = w_ref[R_LN2G:R_LN2G + 1, 0:H]
    b2   = w_ref[R_LN2B:R_LN2B + 1, 0:H]
    bc_w = w_ref[R_BC:R_BC + 1, 0:OUT_L]                # [1, 128] (cols>=C zero)
    emb  = w_ref[R_TOK:R_TOK + VOCAB + S, 0:H]          # [VOCAB+S, H] tok ++ pos

    # ---- one load of the packed integer operand slab, then value slices ----
    islab = islab_ref[...]                                        # [24,128] i32
    ids_col = islab[0:BS, COL_ID:COL_ID + 1]                      # [BS,1]
    maskq   = islab[0:BS, COL_MASK:COL_MASK + 1].astype(f32)      # [BS,1]
    lab_col = islab[0:B, COL_LAB:COL_LAB + 1]                     # [B,1]
    pos_col = islab[0:BS, COL_POS:COL_POS + 1]                    # [BS,1]
    bat_col = islab[0:BS, COL_BAT:COL_BAT + 1]                    # [BS,1]
    maskk   = islab[ROW_KMASK:ROW_KMASK + 1, 0:BS].astype(f32)    # [1,BS]
    bat_row = islab[ROW_KBAT:ROW_KBAT + 1, 0:BS]                  # [1,BS]

    # ---- fused embedding gather + positional add: one one-hot matmul -------
    col = jax.lax.broadcasted_iota(jnp.int32, (BS, VOCAB + S), 1)
    onehot = ((col == ids_col) | (col == VOCAB + pos_col)).astype(f32)
    x = jnp.dot(onehot, emb, preferred_element_type=f32)          # [BS, H]

    # ---- single-head self-attention, fully 2D block-diagonal ---------------
    qkv = jnp.dot(x, wqkv, preferred_element_type=f32)            # [BS, 3H]
    q = qkv[:, 0:H]
    k = qkv[:, H:2 * H]
    v = qkv[:, 2 * H:3 * H]

    scale = 1.0 / float(H) ** 0.5
    scores = jnp.einsum('md,nd->mn', q, k,
                        preferred_element_type=f32) * scale        # [BS, BS]
    # valid key <=> same batch element AND key not padded
    valid = (bat_col == bat_row).astype(f32) * maskk               # [BS, BS]
    scores = scores + (1.0 - valid) * (-1e9)

    m = jnp.max(scores, axis=-1, keepdims=True)
    p = jnp.exp(scores - m)
    p = p * pl.reciprocal(jnp.sum(p, axis=-1, keepdims=True), approx=True)

    ctx = jnp.dot(p, v, preferred_element_type=f32)                # [BS, H]
    attn = jnp.dot(ctx, wo, preferred_element_type=f32)            # [BS, H]

    h = _layer_norm(x + attn, g1, b1)                              # [BS, H]

    # ---- feed-forward (ReLU) ------------------------------------------------
    ff = jnp.maximum(jnp.dot(h, w1, preferred_element_type=f32), 0.0)
    ff = jnp.dot(ff, w2, preferred_element_type=f32)               # [BS, H]
    h2 = _layer_norm(h + ff, g2, b2)

    # ---- masked mean pooling via selection matmul (rows >= B stay zero) ----
    row8 = jax.lax.broadcasted_iota(jnp.int32, (OUT_R, BS), 0)     # [8, BS]
    pool_sel = (row8 == bat_row).astype(f32)                       # [8, BS]
    denom = jnp.maximum(jnp.dot(pool_sel, maskq,
                                preferred_element_type=f32), 1.0)  # [8, 1]
    pooled = jnp.dot(pool_sel, h2 * maskq,
                     preferred_element_type=f32) / denom           # [8, H]

    # ---- classifier head, written straight into the (8,128) output shape ---
    rvalid = (jax.lax.broadcasted_iota(jnp.int32, (OUT_R, 1), 0) < B).astype(f32)
    logits_full = (jnp.dot(pooled, wc_w, preferred_element_type=f32)
                   + bc_w * rvalid)                                # [8, 128]

    # ---- cross-entropy loss (labels one-hot built in-kernel) ---------------
    logits = logits_full[0:B, 0:C]                                 # [B, C]
    lab_1h = (jax.lax.broadcasted_iota(jnp.int32, (B, C), 1)
              == lab_col).astype(f32)                              # [B, C]
    lmax = jnp.max(logits, axis=-1, keepdims=True)
    lse = jnp.log(jnp.sum(jnp.exp(logits - lmax), axis=-1,
                          keepdims=True)) + lmax                   # [B,1]
    tgt = jnp.sum(logits * lab_1h, axis=-1, keepdims=True)         # [B,1]
    loss = jnp.sum(lse - tgt, axis=0, keepdims=True) * (1.0 / B)   # [1,1]

    # ---- single unmasked (8,128) store: logits slab + loss at [0, C] -------
    loss_mask = ((jax.lax.broadcasted_iota(jnp.int32, (OUT_R, OUT_L), 0) == 0) &
                 (jax.lax.broadcasted_iota(jnp.int32, (OUT_R, OUT_L), 1) == C)
                 ).astype(f32)
    out_ref[...] = logits_full + loss_mask * loss


def _vmem_spec():
    return pl.BlockSpec(memory_space=pltpu.MemorySpace.VMEM)


@jax.jit
def wrapped_model_forward(packed_params, input_ids, attention_mask, labels):
    """Equivalent of WrappedModel.forward(input_ids, attention_mask, labels).

    Returns (loss, logits).  Embedding gather + positional add, attention,
    FFN, layernorms, pooling, classifier, label one-hot and cross-entropy all
    run inside a single gridless Pallas kernel.  The wrapper only packs the
    three integer operands into one int32 slab and slices the lane-dense
    output slab.
    """
    ids = input_ids.astype(jnp.int32).reshape(-1)
    msk = attention_mask.astype(jnp.int32).reshape(-1)
    r = jnp.arange(BS, dtype=jnp.int32)

    islab = jnp.zeros((ISLAB_R, SLAB_L), jnp.int32)
    islab = islab.at[0:BS, COL_ID].set(ids)
    islab = islab.at[0:BS, COL_MASK].set(msk)
    islab = islab.at[0:B, COL_LAB].set(labels.astype(jnp.int32))
    islab = islab.at[0:BS, COL_POS].set(r % S)
    islab = islab.at[0:BS, COL_BAT].set(r // S)
    islab = islab.at[ROW_KMASK, 0:BS].set(msk)
    islab = islab.at[ROW_KBAT, 0:BS].set(r // S)

    out = pl.pallas_call(
        _model_kernel,
        out_shape=jax.ShapeDtypeStruct((OUT_R, OUT_L), jnp.float32),
        in_specs=[_vmem_spec(), _vmem_spec()],
        out_specs=_vmem_spec(),
    )(islab, packed_params)

    logits = out[0:B, 0:C]
    loss = out[0, C]
    return loss, logits


def init_params(key):
    ks = jax.random.split(key, 10)
    s = 0.02
    return {
        'tok_emb': s * jax.random.normal(ks[0], (VOCAB, H), jnp.float32),
        'pos_emb': s * jax.random.normal(ks[1], (S, H), jnp.float32),
        'wq': s * jax.random.normal(ks[2], (H, H), jnp.float32),
        'wk': s * jax.random.normal(ks[3], (H, H), jnp.float32),
        'wv': s * jax.random.normal(ks[4], (H, H), jnp.float32),
        'wo': s * jax.random.normal(ks[5], (H, H), jnp.float32),
        'ln1_g': jnp.ones((1, H), jnp.float32),
        'ln1_b': jnp.zeros((1, H), jnp.float32),
        'w1': s * jax.random.normal(ks[6], (H, F), jnp.float32),
        'w2': s * jax.random.normal(ks[7], (F, H), jnp.float32),
        'ln2_g': jnp.ones((1, H), jnp.float32),
        'ln2_b': jnp.zeros((1, H), jnp.float32),
        'wc': s * jax.random.normal(ks[8], (H, C), jnp.float32),
        'bc': jnp.zeros((1, C), jnp.float32),
    }


def pack_params(p):
    """One-time packing of all params into a single lane-dense [304,128] slab."""
    slab = jnp.zeros((SLAB_R, SLAB_L), jnp.float32)
    wqkv = jnp.concatenate([p['wq'], p['wk'], p['wv']], axis=1)     # [H, 3H]
    slab = slab.at[R_WQKV:R_WQKV + H, 0:3 * H].set(wqkv)
    slab = slab.at[R_WO:R_WO + H, 0:H].set(p['wo'])
    slab = slab.at[R_W1:R_W1 + H, 0:F].set(p['w1'])
    slab = slab.at[R_W2:R_W2 + F, 0:H].set(p['w2'])
    slab = slab.at[R_WC:R_WC + H, 0:C].set(p['wc'])
    slab = slab.at[R_LN1G:R_LN1G + 1, 0:H].set(p['ln1_g'])
    slab = slab.at[R_LN1B:R_LN1B + 1, 0:H].set(p['ln1_b'])
    slab = slab.at[R_LN2G:R_LN2G + 1, 0:H].set(p['ln2_g'])
    slab = slab.at[R_LN2B:R_LN2B + 1, 0:H].set(p['ln2_b'])
    slab = slab.at[R_BC:R_BC + 1, 0:C].set(p['bc'])
    slab = slab.at[R_TOK:R_TOK + VOCAB, 0:H].set(p['tok_emb'])
    slab = slab.at[R_POS:R_POS + S, 0:H].set(p['pos_emb'])
    return slab


def _reference_forward(params, input_ids, attention_mask, labels):
    """Pure-JAX reference (no Pallas), used only to validate the kernel."""
    x = jnp.take(params['tok_emb'], input_ids, axis=0) + params['pos_emb'][None]
    mask = attention_mask.astype(jnp.float32)
    q = x @ params['wq']
    k = x @ params['wk']
    v = x @ params['wv']
    scores = jnp.einsum('bqd,bkd->bqk', q, k) / float(H) ** 0.5
    scores = scores + (1.0 - mask)[:, None, :] * (-1e9)
    p = jax.nn.softmax(scores, axis=-1)
    attn = jnp.einsum('bqk,bkd->bqd', p, v) @ params['wo']

    def ln(u, g, b):
        mu = u.mean(-1, keepdims=True)
        var = ((u - mu) ** 2).mean(-1, keepdims=True)
        return (u - mu) * jax.lax.rsqrt(var + LN_EPS) * g + b

    h = ln(x + attn, params['ln1_g'], params['ln1_b'])
    ff = jnp.maximum(h @ params['w1'], 0.0) @ params['w2']
    h2 = ln(h + ff, params['ln2_g'], params['ln2_b'])
    denom = jnp.maximum(mask.sum(-1, keepdims=True), 1.0)
    pooled = (h2 * mask[:, :, None]).sum(1) / denom
    logits = pooled @ params['wc'] + params['bc']
    logp = jax.nn.log_softmax(logits, axis=-1)
    nll = -jnp.take_along_axis(logp, labels[:, None], axis=1)
    return nll.mean(), logits


if __name__ == "__main__":
    key = jax.random.PRNGKey(0)
    kp, ki, km, kl = jax.random.split(key, 4)

    params = init_params(kp)
    packed = pack_params(params)

    input_ids = jax.random.randint(ki, (B, S), 0, VOCAB, dtype=jnp.int32)
    # mask out the last 2 tokens of batch element 1 to exercise the mask path
    attention_mask = jnp.ones((B, S), jnp.int32).at[1, S - 2:].set(0)
    labels = jax.random.randint(kl, (B,), 0, C, dtype=jnp.int32)

    loss, logits = wrapped_model_forward(packed, input_ids, attention_mask,
                                         labels)
    jax.block_until_ready((loss, logits))

    ref_loss, ref_logits = _reference_forward(params, input_ids,
                                              attention_mask, labels)

    assert logits.shape == (B, C)
    assert jnp.isfinite(loss)
    assert jnp.allclose(logits, ref_logits, atol=5e-3, rtol=5e-3)
    assert jnp.allclose(loss, ref_loss, atol=5e-3, rtol=5e-3)
    print("KERNEL_OK")
</pallas_src>

<mosaic_0001>
module attributes {stable_mosaic.version = 11 : i64} {
  func.func @_model_kernel(%arg0: memref<24x128xi32, #tpu.memory_space<vmem>>, %arg1: memref<304x128xf32, #tpu.memory_space<vmem>>, %arg2: memref<8x128xf32, #tpu.memory_space<vmem>>) attributes {dimension_semantics = [], scalar_prefetch = 0 : i64, scratch_operands = 0 : i64, tpu.core_type = #tpu.core_type<tc>} {
    %c0 = arith.constant 0 : index
    %c0_0 = arith.constant 0 : index
    %0 = vector.load %arg1[%c0, %c0_0] : memref<304x128xf32, #tpu.memory_space<vmem>>, vector<32x96xf32>
    %c32 = arith.constant 32 : index
    %c0_1 = arith.constant 0 : index
    %1 = vector.load %arg1[%c32, %c0_1] : memref<304x128xf32, #tpu.memory_space<vmem>>, vector<32x32xf32>
    %c64 = arith.constant 64 : index
    %c0_2 = arith.constant 0 : index
    %2 = vector.load %arg1[%c64, %c0_2] : memref<304x128xf32, #tpu.memory_space<vmem>>, vector<32x64xf32>
    %c96 = arith.constant 96 : index
    %c0_3 = arith.constant 0 : index
    %3 = vector.load %arg1[%c96, %c0_3] : memref<304x128xf32, #tpu.memory_space<vmem>>, vector<64x32xf32>
    %c160 = arith.constant 160 : index
    %c0_4 = arith.constant 0 : index
    %4 = vector.load %arg1[%c160, %c0_4] : memref<304x128xf32, #tpu.memory_space<vmem>>, vector<32x128xf32>
    %c192 = arith.constant 192 : index
    %c0_5 = arith.constant 0 : index
    %5 = vector.load %arg1[%c192, %c0_5] : memref<304x128xf32, #tpu.memory_space<vmem>>, vector<1x32xf32>
    %c200 = arith.constant 200 : index
    %c0_6 = arith.constant 0 : index
    %6 = vector.load %arg1[%c200, %c0_6] : memref<304x128xf32, #tpu.memory_space<vmem>>, vector<1x32xf32>
    %c208 = arith.constant 208 : index
    %c0_7 = arith.constant 0 : index
    %7 = vector.load %arg1[%c208, %c0_7] : memref<304x128xf32, #tpu.memory_space<vmem>>, vector<1x32xf32>
    %c216 = arith.constant 216 : index
    %c0_8 = arith.constant 0 : index
    %8 = vector.load %arg1[%c216, %c0_8] : memref<304x128xf32, #tpu.memory_space<vmem>>, vector<1x32xf32>
    %c224 = arith.constant 224 : index
    %c0_9 = arith.constant 0 : index
    %9 = vector.load %arg1[%c224, %c0_9] : memref<304x128xf32, #tpu.memory_space<vmem>>, vector<1x128xf32>
    %c232 = arith.constant 232 : index
    %c0_10 = arith.constant 0 : index
    %10 = vector.load %arg1[%c232, %c0_10] : memref<304x128xf32, #tpu.memory_space<vmem>>, vector<72x32xf32>
    %c0_11 = arith.constant 0 : index
    %c0_12 = arith.constant 0 : index
    %11 = vector.load %arg0[%c0_11, %c0_12] : memref<24x128xi32, #tpu.memory_space<vmem>>, vector<24x128xi32>
    %12 = vector.extract_strided_slice %11 {offsets = [0, 0], sizes = [16, 1], strides = [1, 1]} : vector<24x128xi32> to vector<16x1xi32>
    %13 = vector.extract_strided_slice %11 {offsets = [0, 1], sizes = [16, 1], strides = [1, 1]} : vector<24x128xi32> to vector<16x1xi32>
    %14 = arith.sitofp %13 : vector<16x1xi32> to vector<16x1xf32>
    %15 = vector.extract_strided_slice %11 {offsets = [0, 2], sizes = [2, 1], strides = [1, 1]} : vector<24x128xi32> to vector<2x1xi32>
    %16 = vector.extract_strided_slice %11 {offsets = [0, 3], sizes = [16, 1], strides = [1, 1]} : vector<24x128xi32> to vector<16x1xi32>
    %17 = vector.extract_strided_slice %11 {offsets = [0, 4], sizes = [16, 1], strides = [1, 1]} : vector<24x128xi32> to vector<16x1xi32>
    %18 = vector.extract_strided_slice %11 {offsets = [16, 0], sizes = [1, 16], strides = [1, 1]} : vector<24x128xi32> to vector<1x16xi32>
    %19 = arith.sitofp %18 : vector<1x16xi32> to vector<1x16xf32>
    %20 = vector.extract_strided_slice %11 {offsets = [17, 0], sizes = [1, 16], strides = [1, 1]} : vector<24x128xi32> to vector<1x16xi32>
    %21 = tpu.iota {dimensions = array<i32: 1>} : vector<16x72xi32>
    %22 = vector.broadcast %12 : vector<16x1xi32> to vector<16x72xi32>
    %23 = arith.cmpi eq, %21, %22 : vector<16x72xi32>
    %c64_i32 = arith.constant 64 : i32
    %24 = vector.broadcast %c64_i32 : i32 to vector<16x1xi32>
    %25 = arith.addi %24, %16 : vector<16x1xi32>
    %26 = vector.broadcast %25 : vector<16x1xi32> to vector<16x72xi32>
    %27 = arith.cmpi eq, %21, %26 : vector<16x72xi32>
    %28 = arith.ori %23, %27 : vector<16x72xi1>
    %29 = arith.extui %28 : vector<16x72xi1> to vector<16x72xi32>
    %30 = arith.sitofp %29 : vector<16x72xi32> to vector<16x72xf32>
    %cst = arith.constant dense<0.000000e+00> : vector<16x32xf32>
    %31 = tpu.matmul %30, %10, %cst {dimension_numbers = #tpu.dot_dimension_numbers<[1], [0], [0], [1], [0, 0, 1, 1], [], []>} : vector<16x72xf32>, vector<72x32xf32>, vector<16x32xf32> -> vector<16x32xf32>
    %cst_13 = arith.constant dense<0.000000e+00> : vector<16x96xf32>
    %32 = tpu.matmul %31, %0, %cst_13 {dimension_numbers = #tpu.dot_dimension_numbers<[1], [0], [0], [1], [0, 0, 1, 1], [], []>} : vector<16x32xf32>, vector<32x96xf32>, vector<16x96xf32> -> vector<16x96xf32>
    %33 = vector.extract_strided_slice %32 {offsets = [0, 0], sizes = [16, 32], strides = [1, 1]} : vector<16x96xf32> to vector<16x32xf32>
    %34 = vector.extract_strided_slice %32 {offsets = [0, 32], sizes = [16, 32], strides = [1, 1]} : vector<16x96xf32> to vector<16x32xf32>
    %35 = vector.extract_strided_slice %32 {offsets = [0, 64], sizes = [16, 32], strides = [1, 1]} : vector<16x96xf32> to vector<16x32xf32>
    "tpu.trace_start"() <{level = 10 : i32, message = "md,nd->mn"}> : () -> ()
    %cst_14 = arith.constant dense<0.000000e+00> : vector<16x16xf32>
    %36 = tpu.matmul %33, %34, %cst_14 {dimension_numbers = #tpu.dot_dimension_numbers<[1], [1], [0], [0], [0, 0, 1, 0], [], []>} : vector<16x32xf32>, vector<16x32xf32>, vector<16x16xf32> -> vector<16x16xf32>
    "tpu.trace_stop"() : () -> ()
    %cst_15 = arith.constant 0.176776692 : f32
    %37 = vector.broadcast %cst_15 : f32 to vector<16x16xf32>
    %38 = arith.mulf %36, %37 : vector<16x16xf32>
    %39 = vector.broadcast %17 : vector<16x1xi32> to vector<16x16xi32>
    %40 = vector.broadcast %20 : vector<1x16xi32> to vector<16x16xi32>
    %41 = arith.cmpi eq, %39, %40 : vector<16x16xi32>
    %42 = arith.extui %41 : vector<16x16xi1> to vector<16x16xi32>
    %43 = arith.sitofp %42 : vector<16x16xi32> to vector<16x16xf32>
    %44 = vector.broadcast %19 : vector<1x16xf32> to vector<16x16xf32>
    %45 = arith.mulf %43, %44 : vector<16x16xf32>
    %cst_16 = arith.constant 1.000000e+00 : f32
    %46 = vector.broadcast %cst_16 : f32 to vector<16x16xf32>
    %47 = arith.subf %46, %45 : vector<16x16xf32>
    %cst_17 = arith.constant -1.000000e+09 : f32
    %48 = vector.broadcast %cst_17 : f32 to vector<16x16xf32>
    %49 = arith.mulf %47, %48 : vector<16x16xf32>
    %50 = arith.addf %38, %49 : vector<16x16xf32>
    %cst_18 = arith.constant dense<0xFF800000> : vector<16xf32>
    %51 = vector.multi_reduction <maximumf>, %50, %cst_18 [1] : vector<16x16xf32> to vector<16xf32>
    %52 = vector.shape_cast %51 : vector<16xf32> to vector<16x1xf32>
    %53 = vector.broadcast %52 : vector<16x1xf32> to vector<16x16xf32>
    %54 = arith.subf %50, %53 : vector<16x16xf32>
    %55 = math.exp %54 : vector<16x16xf32>
    %cst_19 = arith.constant dense<0.000000e+00> : vector<16xf32>
    %56 = vector.multi_reduction <add>, %55, %cst_19 [1] : vector<16x16xf32> to vector<16xf32>
    %57 = vector.shape_cast %56 : vector<16xf32> to vector<16x1xf32>
    %58 = tpu.reciprocal %57 {approx = true} : vector<16x1xf32> -> vector<16x1xf32>
    %59 = vector.broadcast %58 : vector<16x1xf32> to vector<16x16xf32>
    %60 = arith.mulf %55, %59 : vector<16x16xf32>
    %cst_20 = arith.constant dense<0.000000e+00> : vector<16x32xf32>
    %61 = tpu.matmul %60, %35, %cst_20 {dimension_numbers = #tpu.dot_dimension_numbers<[1], [0], [0], [1], [0, 0, 1, 1], [], []>} : vector<16x16xf32>, vector<16x32xf32>, vector<16x32xf32> -> vector<16x32xf32>
    %cst_21 = arith.constant dense<0.000000e+00> : vector<16x32xf32>
    %62 = tpu.matmul %61, %1, %cst_21 {dimension_numbers = #tpu.dot_dimension_numbers<[1], [0], [0], [1], [0, 0, 1, 1], [], []>} : vector<16x32xf32>, vector<32x32xf32>, vector<16x32xf32> -> vector<16x32xf32>
    %63 = arith.addf %31, %62 : vector<16x32xf32>
    %cst_22 = arith.constant dense<0.000000e+00> : vector<16xf32>
    %64 = vector.multi_reduction <add>, %63, %cst_22 [1] : vector<16x32xf32> to vector<16xf32>
    %65 = vector.shape_cast %64 : vector<16xf32> to vector<16x1xf32>
    %cst_23 = arith.constant 3.200000e+01 : f32
    %66 = vector.broadcast %cst_23 : f32 to vector<16x1xf32>
    %67 = arith.divf %65, %66 : vector<16x1xf32>
    %68 = vector.broadcast %67 : vector<16x1xf32> to vector<16x32xf32>
    %69 = arith.subf %63, %68 : vector<16x32xf32>
    %70 = arith.mulf %69, %69 : vector<16x32xf32>
    %cst_24 = arith.constant dense<0.000000e+00> : vector<16xf32>
    %71 = vector.multi_reduction <add>, %70, %cst_24 [1] : vector<16x32xf32> to vector<16xf32>
    %72 = vector.shape_cast %71 : vector<16xf32> to vector<16x1xf32>
    %cst_25 = arith.constant 3.200000e+01 : f32
    %73 = vector.broadcast %cst_25 : f32 to vector<16x1xf32>
    %74 = arith.divf %72, %73 : vector<16x1xf32>
    %cst_26 = arith.constant 9.99999974E-6 : f32
    %75 = vector.broadcast %cst_26 : f32 to vector<16x1xf32>
    %76 = arith.addf %74, %75 : vector<16x1xf32>
    %77 = math.rsqrt %76 : vector<16x1xf32>
    %78 = vector.broadcast %77 : vector<16x1xf32> to vector<16x32xf32>
    %79 = arith.mulf %69, %78 : vector<16x32xf32>
    %80 = vector.broadcast %5 : vector<1x32xf32> to vector<16x32xf32>
    %81 = arith.mulf %79, %80 : vector<16x32xf32>
    %82 = vector.broadcast %6 : vector<1x32xf32> to vector<16x32xf32>
    %83 = arith.addf %81, %82 : vector<16x32xf32>
    %cst_27 = arith.constant dense<0.000000e+00> : vector<16x64xf32>
    %84 = tpu.matmul %83, %2, %cst_27 {dimension_numbers = #tpu.dot_dimension_numbers<[1], [0], [0], [1], [0, 0, 1, 1], [], []>} : vector<16x32xf32>, vector<32x64xf32>, vector<16x64xf32> -> vector<16x64xf32>
    %cst_28 = arith.constant 0.000000e+00 : f32
    %85 = vector.broadcast %cst_28 : f32 to vector<16x64xf32>
    %86 = arith.maximumf %84, %85 : vector<16x64xf32>
    %cst_29 = arith.constant dense<0.000000e+00> : vector<16x32xf32>
    %87 = tpu.matmul %86, %3, %cst_29 {dimension_numbers = #tpu.dot_dimension_numbers<[1], [0], [0], [1], [0, 0, 1, 1], [], []>} : vector<16x64xf32>, vector<64x32xf32>, vector<16x32xf32> -> vector<16x32xf32>
    %88 = arith.addf %83, %87 : vector<16x32xf32>
    %cst_30 = arith.constant dense<0.000000e+00> : vector<16xf32>
    %89 = vector.multi_reduction <add>, %88, %cst_30 [1] : vector<16x32xf32> to vector<16xf32>
    %90 = vector.shape_cast %89 : vector<16xf32> to vector<16x1xf32>
    %cst_31 = arith.constant 3.200000e+01 : f32
    %91 = vector.broadcast %cst_31 : f32 to vector<16x1xf32>
    %92 = arith.divf %90, %91 : vector<16x1xf32>
    %93 = vector.broadcast %92 : vector<16x1xf32> to vector<16x32xf32>
    %94 = arith.subf %88, %93 : vector<16x32xf32>
    %95 = arith.mulf %94, %94 : vector<16x32xf32>
    %cst_32 = arith.constant dense<0.000000e+00> : vector<16xf32>
    %96 = vector.multi_reduction <add>, %95, %cst_32 [1] : vector<16x32xf32> to vector<16xf32>
    %97 = vector.shape_cast %96 : vector<16xf32> to vector<16x1xf32>
    %cst_33 = arith.constant 3.200000e+01 : f32
    %98 = vector.broadcast %cst_33 : f32 to vector<16x1xf32>
    %99 = arith.divf %97, %98 : vector<16x1xf32>
    %cst_34 = arith.constant 9.99999974E-6 : f32
    %100 = vector.broadcast %cst_34 : f32 to vector<16x1xf32>
    %101 = arith.addf %99, %100 : vector<16x1xf32>
    %102 = math.rsqrt %101 : vector<16x1xf32>
    %103 = vector.broadcast %102 : vector<16x1xf32> to vector<16x32xf32>
    %104 = arith.mulf %94, %103 : vector<16x32xf32>
    %105 = vector.broadcast %7 : vector<1x32xf32> to vector<16x32xf32>
    %106 = arith.mulf %104, %105 : vector<16x32xf32>
    %107 = vector.broadcast %8 : vector<1x32xf32> to vector<16x32xf32>
    %108 = arith.addf %106, %107 : vector<16x32xf32>
    %109 = tpu.iota {dimensions = array<i32: 0>} : vector<8x16xi32>
    %110 = vector.broadcast %20 : vector<1x16xi32> to vector<8x16xi32>
    %111 = arith.cmpi eq, %109, %110 : vector<8x16xi32>
    %112 = arith.extui %111 : vector<8x16xi1> to vector<8x16xi32>
    %113 = arith.sitofp %112 : vector<8x16xi32> to vector<8x16xf32>
    %cst_35 = arith.constant dense<0.000000e+00> : vector<8x1xf32>
    %114 = tpu.matmul %113, %14, %cst_35 {dimension_numbers = #tpu.dot_dimension_numbers<[1], [0], [0], [1], [0, 0, 1, 1], [], []>} : vector<8x16xf32>, vector<16x1xf32>, vector<8x1xf32> -> vector<8x1xf32>
    %cst_36 = arith.constant 1.000000e+00 : f32
    %115 = vector.broadcast %cst_36 : f32 to vector<8x1xf32>
    %116 = arith.maximumf %114, %115 : vector<8x1xf32>
    %117 = vector.broadcast %14 : vector<16x1xf32> to vector<16x32xf32>
    %118 = arith.mulf %108, %117 : vector<16x32xf32>
    %cst_37 = arith.constant dense<0.000000e+00> : vector<8x32xf32>
    %119 = tpu.matmul %113, %118, %cst_37 {dimension_numbers = #tpu.dot_dimension_numbers<[1], [0], [0], [1], [0, 0, 1, 1], [], []>} : vector<8x16xf32>, vector<16x32xf32>, vector<8x32xf32> -> vector<8x32xf32>
    %120 = vector.broadcast %116 : vector<8x1xf32> to vector<8x32xf32>
    %121 = arith.divf %119, %120 : vector<8x32xf32>
    %122 = tpu.iota {dimensions = array<i32: 0>} : vector<8x1xi32>
    %c2_i32 = arith.constant 2 : i32
    %123 = vector.broadcast %c2_i32 : i32 to vector<8x1xi32>
    %124 = arith.cmpi slt, %122, %123 : vector<8x1xi32>
    %125 = arith.extui %124 : vector<8x1xi1> to vector<8x1xi32>
    %126 = arith.sitofp %125 : vector<8x1xi32> to vector<8x1xf32>
    %cst_38 = arith.constant dense<0.000000e+00> : vector<8x128xf32>
    %127 = tpu.matmul %121, %4, %cst_38 {dimension_numbers = #tpu.dot_dimension_numbers<[1], [0], [0], [1], [0, 0, 1, 1], [], []>} : vector<8x32xf32>, vector<32x128xf32>, vector<8x128xf32> -> vector<8x128xf32>
    %128 = vector.broadcast %9 : vector<1x128xf32> to vector<8x128xf32>
    %129 = vector.broadcast %126 : vector<8x1xf32> to vector<8x128xf32>
    %130 = arith.mulf %128, %129 : vector<8x128xf32>
    %131 = arith.addf %127, %130 : vector<8x128xf32>
    %132 = vector.extract_strided_slice %131 {offsets = [0, 0], sizes = [2, 16], strides = [1, 1]} : vector<8x128xf32> to vector<2x16xf32>
    %133 = tpu.iota {dimensions = array<i32: 1>} : vector<2x16xi32>
    %134 = vector.broadcast %15 : vector<2x1xi32> to vector<2x16xi32>
    %135 = arith.cmpi eq, %133, %134 : vector<2x16xi32>
    %136 = arith.extui %135 : vector<2x16xi1> to vector<2x16xi32>
    %137 = arith.sitofp %136 : vector<2x16xi32> to vector<2x16xf32>
    %cst_39 = arith.constant dense<0xFF800000> : vector<2xf32>
    %138 = vector.multi_reduction <maximumf>, %132, %cst_39 [1] : vector<2x16xf32> to vector<2xf32>
    %139 = vector.shape_cast %138 : vector<2xf32> to vector<2x1xf32>
    %140 = vector.broadcast %139 : vector<2x1xf32> to vector<2x16xf32>
    %141 = arith.subf %132, %140 : vector<2x16xf32>
    %142 = math.exp %141 : vector<2x16xf32>
    %cst_40 = arith.constant dense<0.000000e+00> : vector<2xf32>
    %143 = vector.multi_reduction <add>, %142, %cst_40 [1] : vector<2x16xf32> to vector<2xf32>
    %144 = vector.shape_cast %143 : vector<2xf32> to vector<2x1xf32>
    %145 = math.log %144 : vector<2x1xf32>
    %146 = arith.addf %145, %139 : vector<2x1xf32>
    %147 = arith.mulf %132, %137 : vector<2x16xf32>
    %cst_41 = arith.constant dense<0.000000e+00> : vector<2xf32>
    %148 = vector.multi_reduction <add>, %147, %cst_41 [1] : vector<2x16xf32> to vector<2xf32>
    %149 = vector.shape_cast %148 : vector<2xf32> to vector<2x1xf32>
    %150 = arith.subf %146, %149 : vector<2x1xf32>
    %cst_42 = arith.constant dense<0.000000e+00> : vector<1xf32>
    %151 = vector.multi_reduction <add>, %150, %cst_42 [0] : vector<2x1xf32> to vector<1xf32>
    %152 = vector.shape_cast %151 : vector<1xf32> to vector<1x1xf32>
    %cst_43 = arith.constant 5.000000e-01 : f32
    %153 = vector.broadcast %cst_43 : f32 to vector<1x1xf32>
    %154 = arith.mulf %152, %153 : vector<1x1xf32>
    %155 = tpu.iota {dimensions = array<i32: 0>} : vector<8x128xi32>
    %c0_i32 = arith.constant 0 : i32
    %156 = vector.broadcast %c0_i32 : i32 to vector<8x128xi32>
    %157 = arith.cmpi eq, %155, %156 : vector<8x128xi32>
    %158 = tpu.iota {dimensions = array<i32: 1>} : vector<8x128xi32>
    %c16_i32 = arith.constant 16 : i32
    %159 = vector.broadcast %c16_i32 : i32 to vector<8x128xi32>
    %160 = arith.cmpi eq, %158, %159 : vector<8x128xi32>
    %161 = arith.andi %157, %160 : vector<8x128xi1>
    %162 = arith.extui %161 : vector<8x128xi1> to vector<8x128xi32>
    %163 = arith.sitofp %162 : vector<8x128xi32> to vector<8x128xf32>
    %164 = vector.broadcast %154 : vector<1x1xf32> to vector<8x128xf32>
    %165 = arith.mulf %163, %164 : vector<8x128xf32>
    %166 = arith.addf %131, %165 : vector<8x128xf32>
    %c0_44 = arith.constant 0 : index
    %c0_45 = arith.constant 0 : index
    %167 = vector.load %arg2[%c0_44, %c0_45] : memref<8x128xf32, #tpu.memory_space<vmem>>, vector<8x128xf32>
    tpu.vector_store %arg2[%c0_44, %c0_45], %166 {strides = array<i32>} : memref<8x128xf32, #tpu.memory_space<vmem>>, vector<8x128xf32>,
    return
  }
}

</mosaic_0001>

<bundles_post_ra>
// kernel: wrapped_model_forward.1
= control target key start
LH: loop header
LB: loop body
LE: loop exit
PB: predicated region body
PF: predicated region fallthrough
CT: control target
= control target key end

     0   :  { %v1345_v0 = vmov 0   ;;  %v1346_v7 = vmov 3   ;;  %v55_v17 = vlaneseq  ;;  %vm81_vm5 = vcmask 588800   ;;  %s1349_s11 = smov 96   ;;  %s1351_s21 = smov 127   ;;  %s1591_s0 = inlined_call_operand.vmem [shape: s32[24,128], index: 0, kind: input, shape index: {}]   ;;  %s1592_s1 = inlined_call_operand.vmem [shape: f32[304,128], index: 1, kind: input, shape index: {}]   ;;  %s1593_s2 = inlined_call_operand.vmem [shape: f32[8,128], index: 2, kind: output, shape index: {}]  }
   0x1   :  { %1315 = vset.pattern.permute.xlu1 %v1345_v0  ;;  %1313 = vset.pattern.permute.xlu0 %v1345_v0  ;;  %v1375_v1 = vld [vmem:[%s1591_s0 + $0x8] sm:$0xff]  ;;  %v1380_v2 = vld [vmem:[%s1591_s0] sm:$0xff]  ;;  %v46_v8 = vld [vmem:[%s1592_s1 + $0x118] sm:$0xff]  ;;  %v1347_v23 = vmov 0.0   ;;  %vm163_vm7 = vcmask 261120   ;;  %v1348_v30 = vmov 4  }
   0x2   :  { %v48_v3 = vld [vmem:[%s1592_s1 + $0x128] sm:$0xff]  ;;  %61 = vperm.xlu1 %1315, %v1375_v1   ;;  %58 = vperm.xlu0 %1313, %v1380_v2   ;;  %v47_v4 = vld [vmem:[%s1592_s1 + $0x120] sm:$0xff]  ;;  %v66_v5 = vadd.s32 64, %v1375_v1  ;;  %v65_v6 = vadd.s32 64, %v1380_v2  ;;  %v45_v9 = vld [vmem:[%s1592_s1 + $0x110] sm:$0xff]  ;;  %v1419_v20 = vand.u32 127, %v55_v17 }
   0x3   :  { %1191 = vmatprep.subr.mxu0 %v48_v3  ;;  %v14_v10 = vld [vmem:[%s1592_s1 + $0x18] sm:$0xff]  ;;  %v13_v11 = vld [vmem:[%s1592_s1 + $0x10] sm:$0xff]  ;;  %v44_v12 = vld [vmem:[%s1592_s1 + $0x108] sm:$0xff]  ;;  %v1449_v35 = vshrl.u32 %v55_v17, 7  ;;  %vm364_vm10 = vcmask 130048   ;;  %vm679_vm11 = vcmask 523264  }
   0x4   :  { %1192 = vmatpush3.msra.mxu0 %v48_v3  ;;  %1212 = vmatprep.subr.mxu1 %v14_v10  ;;  %v43_v13 = vld [vmem:[%s1592_s1 + $0x100] sm:$0xff]  ;;  %v42_v14 = vld [vmem:[%s1592_s1 + $0xf8] sm:$0xff]  ;;  %v41_v15 = vld [vmem:[%s1592_s1 + $0xf0] sm:$0xff]  ;;  %vm1352_vm12 = vmmov 0  }
   0x5   :  { %1193 = vmatprep.subr.mxu0 %v47_v4  ;;  %1213 = vmatpush3.msra.mxu1 %v14_v10  ;;  %v40_v16 = vld [vmem:[%s1592_s1 + $0xe8] sm:$0xff]  ;;  %v11_v27 = vld [vmem:[%s1592_s1] sm:$0xff]  ;;  %v344_v36 = vsub.s32 1, %v1449_v35  ;;  %v51_v37 = vld [vmem:[%s1591_s0 + $0x10] sm:$0xff]  ;;  %v354_v41 = vsub.s32 0, %v1449_v35  ;;  %s1350_s0 = smov 64  }
   0x6   :  { %1316 = vset.pattern.permute.xlu1 %v1346_v7  ;;  %1314 = vset.pattern.permute.xlu0 %v1346_v7  ;;  %v12_v26 = vld [vmem:[%s1592_s1 + $0x8] sm:$0xff]  ;;  %v54_v40 = vcvt.s32.f32 %v51_v37  ;;  %v17_v10 = vld [vmem:[%s1592_s1 + $0x30] sm:$0xff]  ;;  %vm975_vm14 = vcmp.lt.s32.totalorder %v1449_v35, 2 }
   0x7   :  { %71 = vperm.xlu1 %1316, %v66_v5   ;;  %68 = vperm.xlu0 %1314, %v65_v6   ;;  %v1455_v38 = vrot.slane %v51_v37, %v344_v36 }
   0x8   :  { %1194 = vmatpush3.msra.mxu0 %v47_v4  ;;  %1214 = vmatprep.subr.mxu1 %v13_v11  ;;  %v355_v43 = vrot.slane %v54_v40, %v354_v41 }
   0x9   :  { %1195 = vmatprep.subr.mxu0 %v46_v8  ;;  %1215 = vmatpush3.msra.mxu1 %v13_v11  ;;  %vm803_vm13 = vcmp.eq.s32.totalorder %v1449_v35, %v1455_v38 }
   0xa   :  { %1196 = vmatpush3.msra.mxu0 %v46_v8  ;;  %1216 = vmatprep.subr.mxu1 %v12_v26 }
   0xb   :  { %1197 = vmatprep.subr.mxu0 %v45_v9  ;;  %1217 = vmatpush3.msra.mxu1 %v12_v26 }
   0xc   :  { %1198 = vmatpush3.msra.mxu0 %v45_v9  ;;  %1218 = vmatprep.subr.mxu1 %v11_v27  ;;  %v18_v9 = vld [vmem:[%s1592_s1 + $0x38] sm:$0xff] }
   0xd   :  { %1199 = vmatprep.subr.mxu0 %v44_v12  ;;  %1219 = vmatpush3.msra.mxu1 %v11_v27 }
   0xe   :  { %1200 = vmatpush3.msra.mxu0 %v44_v12  ;;  %1318 = vset.pattern.permute.xlu0 %v1348_v30 }
   0xf   :  { %1201 = vmatprep.subr.mxu0 %v43_v13  ;;  %1317 = vset.pattern.permute.xlu1 %v1348_v30 }
  0x10   :  { %1202 = vmatpush3.msra.mxu0 %v43_v13 }
  0x11   :  { %1203 = vmatprep.subr.mxu0 %v42_v14 }
  0x12   :  { %1204 = vmatpush3.msra.mxu0 %v42_v14 }
  0x13   :  { %1205 = vmatprep.subr.mxu0 %v41_v15 }
  0x14   :  { %1206 = vmatpush3.msra.mxu0 %v41_v15 }
  0x15   :  { %1207 = vmatprep.subr.mxu0 %v40_v16 }
  0x16   :  { %1208 = vmatpush3.msra.mxu0 %v40_v16 }
  0x17   :  { %1237 = vmatprep.subr.mxu0 %v18_v9 }
  0x7d   :  { %v59_v18 = vpop.permute.xlu0 %58  ;;  %v62_v19 = vpop.permute.xlu1 %61 }
  0x7e   :  { %vm64_vm0 = vcmp.eq.s32.totalorder %v1419_v20, %v62_v19  ;;  %vm63_vm3 = vcmp.eq.s32.totalorder %v1419_v20, %v59_v18  ;;  %v16_v19 = vld [vmem:[%s1592_s1 + $0x28] sm:$0xff] }
  0x82   :  { %v72_v21 = vpop.permute.xlu1 %71  ;;  %v69_v22 = vpop.permute.xlu0 %68 }
  0x83   :  { %vm74_vm1 = vcmp.eq.s32.totalorder %v1419_v20, %v72_v21  ;;  %vm73_vm2 = vcmp.eq.s32.totalorder %v1419_v20, %v69_v22  ;;  %v15_v21 = vld [vmem:[%s1592_s1 + $0x20] sm:$0xff] }
  0x84   :  { %vm76_vm4 = vmor %vm64_vm0, %vm74_vm1  ;;  %vm1062_vm0 = vcmask 123904   ;;  %vm1080_vm1 = vcmask 1041408  }
  0x85   :  { %v1102_v24 = vsel %vm76_vm4, 1.0, %v1347_v23  ;;  %vm75_vm6 = vmor %vm63_vm3, %vm73_vm2  ;;  %vm1089_vm2 = vcmp.eq.s32.totalorder %v1449_v35, 0  ;;  %vm1090_vm3 = vcmp.eq.s32.totalorder %v1419_v20, 16 }
  0x86   :  { %v1101_v25 = vsel %vm75_vm6, 1.0, %v1347_v23  ;;  %vm1091_vm4 = vmand %vm1089_vm2, %vm1090_vm3 }
  0x87   :  { %1209 = vmatprep.mubr.msk.f32.mxu0 %vm81_vm5, %v1101_v25 }
  0x88   :  { %1210 = vmatmul.mubr.msk.f32.vlgmr.msra.gmra.mxu0 %vm81_vm5, %v1102_v24 }
  0x89   :  { %1238 = vmatpush3.msra.mxu0 %v18_v9  ;;  %v23_v9 = vld [vmem:[%s1592_s1 + $0x60] sm:$0xff] }
  0x8a   :  { %1239 = vmatprep.subr.mxu0 %v17_v10 }
  0x8b   :  { %1240 = vmatpush3.msra.mxu0 %v17_v10 }
  0x8c   :  { %1241 = vmatprep.subr.mxu0 %v16_v19 }
  0x8d   :  { %1242 = vmatpush3.msra.mxu0 %v16_v19 }
  0x8e   :  { %1243 = vmatprep.subr.mxu0 %v15_v21 }
  0x8f   :  { %1244 = vmatpush3.msra.mxu0 %v15_v21  ;;  %v53_v21 = vcvt.s32.f32 %v1375_v1 }
 0x148   :  { %v1433_v28 = vpop.f32.mrf.mxu0 }
 0x14a   :  { %v1435_v29 = vpop.f32.mrf.mxu0 }
 0x14b   :  { %1220 = vmatprep.mubr.msk.f32.mxu1 %vm163_vm7, %v1435_v29 }
 0x14c   :  { %1221 = vmatmul.mubr.msk.f32.vlgmr.msra.gmra.mxu1 %vm163_vm7, %v1433_v28 }
 0x20c   :  { %v1222_v31 = vpop.f32.mrf.mxu1 }
 0x20d   :  { %249 = vrot.lane.b32.xlu1 %v1222_v31, %s1349_s11 }
 0x20e   :  { %v236_v32 = vpop.f32.mrf.mxu1 }
 0x20f   :  { %247 = vrot.lane.b32.xlu0 %v236_v32, %s1349_s11  ;;  %1227 = vmatprep.mubr.msk.f32.mxu1 %vm163_vm7, %v236_v32 }
 0x211   :  { %337 = vperm.xlu1 %1317, %v1380_v2  }
 0x213   :  { %340 = vperm.xlu0 %1318, %v1375_v1  }
 0x27f   :  { %v250_v33 = vpop.permute.xlu1 %249 }
 0x280   :  { %1223 = vmatprep.subr.msk.mxu1 %vm163_vm7, %v250_v33 }
 0x281   :  { %1224 = vmatpush3.xpose.msk.msra.mxu1 %vm163_vm7, %v250_v33  ;;  %v248_v34 = vpop.permute.xlu0 %247 }
 0x282   :  { %1225 = vmatprep.subr.msk.mxu1 %vm163_vm7, %v248_v34 }
 0x285   :  { %1226 = vmatpush3.xpose.msk.msra.mxu1 %vm163_vm7, %v248_v34 }
 0x288   :  { %1228 = vmatmul.mubr.msk.f32.vlgmr.msra.gmra.mxu1 %vm163_vm7, %v1222_v31 }
 0x28c   :  { %v338_v42 = vpop.permute.xlu1 %337 }
 0x28d   :  { %vm346_vm9 = vcmp.eq.s32.totalorder %v338_v42, %v1455_v38 }
 0x28e   :  { %v341_v39 = vpop.permute.xlu0 %340  ;;  %v1111_v45 = vsel %vm346_vm9, 1.0, %v1347_v23 }
 0x28f   :  { %vm347_vm8 = vcmp.eq.s32.totalorder %v341_v39, %v1455_v38  ;;  %v356_v47 = vmul.f32 %v1111_v45, %v355_v43  ;;  %v20_v45 = vld [vmem:[%s1592_s1 + $0x48] sm:$0xff] }
 0x290   :  { %v1112_v44 = vsel %vm347_vm8, 1.0, %v1347_v23 }
 0x291   :  { %v357_v46 = vmul.f32 %v1112_v44, %v355_v43  ;;  %v358_v49 = vsub.f32 1.0, %v356_v47  ;;  %v21_v44 = vld [vmem:[%s1592_s1 + $0x50] sm:$0xff]  ;;  %v30_v47 = vld [vmem:[%s1592_s1 + $0x98] sm:$0xff] }
 0x292   :  { %1259 = vmatprep.subr.mxu0 %v30_v47 }
 0x293   :  { %v359_v48 = vsub.f32 1.0, %v357_v46  ;;  %v360_v52 = vmul.f32 -1e+09, %v358_v49  ;;  %v19_v46 = vld [vmem:[%s1592_s1 + $0x40] sm:$0xff]  ;;  %v28_v49 = vld [vmem:[%s1592_s1 + $0x88] sm:$0xff] }
 0x295   :  { %v361_v50 = vmul.f32 -1e+09, %v359_v48  ;;  %v29_v48 = vld [vmem:[%s1592_s1 + $0x90] sm:$0xff] }
 0x348   :  { %v1229_v51 = vpop.f32.mrf.mxu1 }
 0x349   :  { %v335_v53 = vmul.f32 0.17677669, %v1229_v51  ;;  %v26_v51 = vld [vmem:[%s1592_s1 + $0x78] sm:$0xff] }
 0x34a   :  { %v325_v54 = vpop.f32.mrf.mxu1 }
 0x34b   :  { %v334_v55 = vmul.f32 0.17677669, %v325_v54  ;;  %v363_v56 = vadd.f32 %v361_v50, %v335_v53  ;;  %v27_v50 = vld [vmem:[%s1592_s1 + $0x80] sm:$0xff] }
 0x34d   :  { %v368_v57 = vsel %vm364_vm10, %v363_v56, -inf  ;;  %v362_v58 = vadd.f32 %v360_v52, %v334_v55 }
 0x34e   :  { %369 = vmax.xlane.f32.xlu0 %v368_v57 }
 0x34f   :  { %v365_v59 = vsel %vm364_vm10, %v362_v58, -inf }
 0x350   :  { %366 = vmax.xlane.f32.xlu1 %v365_v59  ;;  %v1117_v59 = vld [vmem:[%s1592_s1 + $0xc0] ss:$0 sm:$0xff] }
 0x3d7   :  { %v370_v60 = vpop.xlane.xlu0 %369 }
 0x3d8   :  { %v372_v61 = vsub.f32 %v363_v56, %v370_v60 }
 0x3d9   :  { %v367_v62 = vpop.xlane.xlu1 %366 }
 0x3da   :  { %v375_v63 = vmul.f32 1.442695, %v372_v61  ;;  %v371_v3 = vsub.f32 %v362_v58, %v367_v62 }
 0x3dc   :  { %1323 = vpow2.f32 %v375_v63  ;;  %v373_v4 = vmul.f32 1.442695, %v371_v3  ;;  %v1118_v3 = vld [vmem:[%s1592_s1 + $0xc8] ss:$0 sm:$0xff] }
 0x3de   :  { %1325 = vpow2.f32 %v373_v4 }
 0x3e9   :  { %v1324_v5 = vpop.eup %1323 }
 0x3ea   :  { %v380_v6 = vsel %vm364_vm10, %v1324_v5, 0.0 }
 0x3eb   :  { %v1326_v7 = vpop.eup %1325  ;;  %381 = vadd.xlane.f32.xlu0 %v380_v6 }
 0x3ec   :  { %v377_v8 = vsel %vm364_vm10, %v1326_v7, 0.0 }
 0x3ed   :  { %378 = vadd.xlane.f32.xlu1 %v377_v8  ;;  %v24_v8 = vld [vmem:[%s1592_s1 + $0x68] sm:$0xff] }
 0x3fe   :  { %389 = vrot.lane.b32.xlu1 %v1222_v31, %s1350_s0 }
 0x401   :  { %387 = vrot.lane.b32.xlu0 %v236_v32, %s1350_s0 }
 0x474   :  { %v382_v11 = vpop.xlane.xlu0 %381 }
 0x475   :  { %1327 = vrcp.f32 %v382_v11 }
 0x476   :  { %v379_v12 = vpop.xlane.xlu1 %378 }
 0x477   :  { %1329 = vrcp.f32 %v379_v12 }
 0x478   :  { %v388_v14 = vpop.permute.xlu0 %387 }
 0x47a   :  { %v390_v13 = vpop.permute.xlu1 %389 }
 0x47b   :  { %1230 = vmatprep.subr.mxu1 %v390_v13 }
 0x47c   :  { %1231 = vmatpush3.msra.mxu1 %v390_v13 }
 0x47d   :  { %1232 = vmatprep.subr.mxu1 %v388_v14 }
 0x47e   :  { %1233 = vmatpush3.msra.mxu1 %v388_v14 }
 0x482   :  { %v1328_v15 = vpop.eup %1327 }
 0x483   :  { %v386_v18 = vmul.f32 %v1328_v15, %v1324_v5 }
 0x484   :  { %v1330_v16 = vpop.eup %1329 }
 0x485   :  { %v385_v17 = vmul.f32 %v1330_v16, %v1326_v7  ;;  %v25_v7 = vld [vmem:[%s1592_s1 + $0x70] sm:$0xff] }
 0x487   :  { %1234 = vmatprep.mubr.msk.f32.mxu1 %vm364_vm10, %v385_v17 }
 0x488   :  { %1235 = vmatmul.mubr.msk.f32.vlgmr.msra.gmra.mxu1 %vm364_vm10, %v386_v18 }
 0x548   :  { %v1236_v22 = vpop.f32.mrf.mxu1 }
 0x54a   :  { %v465_v24 = vpop.f32.mrf.mxu1 }
 0x54b   :  { %1245 = vmatprep.mubr.msk.f32.mxu0 %vm163_vm7, %v465_v24  ;;  %v1353_v24 = vmov 1  }
 0x54c   :  { %1246 = vmatmul.mubr.msk.f32.vlgmr.msra.gmra.mxu0 %vm163_vm7, %v1236_v22  ;;  %v52_v22 = vcvt.s32.f32 %v1380_v2  ;;  %1319 = vset.pattern.permute.xlu1 %v1353_v24 }
 0x54d   :  { %1260 = vmatpush3.msra.mxu0 %v30_v47  ;;  %1320 = vset.pattern.permute.xlu0 %v1353_v24 }
 0x54e   :  { %1261 = vmatprep.subr.mxu0 %v29_v48 }
 0x54f   :  { %1262 = vmatpush3.msra.mxu0 %v29_v48 }
 0x550   :  { %1263 = vmatprep.subr.mxu0 %v28_v49 }
 0x551   :  { %1264 = vmatpush3.msra.mxu0 %v28_v49 }
 0x552   :  { %1265 = vmatprep.subr.mxu0 %v27_v50 }
 0x553   :  { %1266 = vmatpush3.msra.mxu0 %v27_v50 }
 0x554   :  { %1267 = vmatprep.subr.mxu0 %v26_v51 }
 0x555   :  { %1268 = vmatpush3.msra.mxu0 %v26_v51 }
 0x556   :  { %1269 = vmatprep.subr.mxu0 %v25_v7 }
 0x557   :  { %1270 = vmatpush3.msra.mxu0 %v25_v7 }
 0x558   :  { %1271 = vmatprep.subr.mxu0 %v24_v8 }
 0x559   :  { %1272 = vmatpush3.msra.mxu0 %v24_v8 }
 0x55a   :  { %1273 = vmatprep.subr.mxu0 %v23_v9 }
 0x55b   :  { %1274 = vmatpush3.msra.mxu0 %v23_v9  ;;  %v1129_v9 = vld [vmem:[%s1592_s1 + $0xe0] ss:$0 sm:$0xff] }
 0x60c   :  { %v1247_v25 = vpop.f32.mrf.mxu0 }
 0x60d   :  { %v556_v26 = vadd.f32 %v1247_v25, %v1433_v28 }
 0x60e   :  { %v546_v27 = vpop.f32.mrf.mxu0 }
 0x60f   :  { %v555_v30 = vadd.f32 %v546_v27, %v1435_v29  ;;  %v560_v31 = vsel %vm163_vm7, %v556_v26, 0.0  ;;  %v22_v29 = vld [vmem:[%s1592_s1 + $0x58] sm:$0xff] }
 0x610   :  { %561 = vadd.xlane.f32.xlu0 %v560_v31  ;;  %1248 = vmatprep.subr.mxu1 %v22_v29 }
 0x611   :  { %v557_v32 = vsel %vm163_vm7, %v555_v30, 0.0  ;;  %1249 = vmatpush3.msra.mxu1 %v22_v29 }
 0x612   :  { %558 = vadd.xlane.f32.xlu1 %v557_v32  ;;  %1250 = vmatprep.subr.mxu1 %v21_v44 }
 0x613   :  { %1251 = vmatpush3.msra.mxu1 %v21_v44 }
 0x614   :  { %1252 = vmatprep.subr.mxu1 %v20_v45 }
 0x615   :  { %1253 = vmatpush3.msra.mxu1 %v20_v45  ;;  %v1123_v45 = vld [vmem:[%s1592_s1 + $0xd0] ss:$0 sm:$0xff] }
 0x616   :  { %1254 = vmatprep.subr.mxu1 %v19_v46 }
 0x617   :  { %1255 = vmatpush3.msra.mxu1 %v19_v46 }
 0x618   :  { %1278 = vmatprep.subr.mxu1 %v1347_v23 }
 0x699   :  { %v562_v33 = vpop.xlane.xlu0 %561 }
 0x69a   :  { %v565_v34 = vmul.f32 0.03125, %v562_v33 }
 0x69b   :  { %v559_v36 = vpop.xlane.xlu1 %558 }
 0x69c   :  { %v567_v37 = vsub.f32 %v556_v26, %v565_v34  ;;  %v564_v39 = vmul.f32 0.03125, %v559_v36  ;;  %v1125_v34 = vsel %vm803_vm13, 1.0, %v1347_v23 }
 0x69e   :  { %v566_v40 = vsub.f32 %v555_v30, %v564_v39  ;;  %v569_v41 = vmul.f32 %v567_v37, %v567_v37 }
 0x6a0   :  { %v573_v42 = vsel %vm163_vm7, %v569_v41, 0.0  ;;  %v568_v43 = vmul.f32 %v566_v40, %v566_v40 }
 0x6a1   :  { %574 = vadd.xlane.f32.xlu0 %v573_v42 }
 0x6a2   :  { %v570_v28 = vsel %vm163_vm7, %v568_v43, 0.0 }
 0x6a3   :  { %571 = vadd.xlane.f32.xlu1 %v570_v28 }
 0x72a   :  { %v575_v52 = vpop.xlane.xlu0 %574 }
 0x72b   :  { %v577_v53 = vmul.f32 0.03125, %v575_v52 }
 0x72c   :  { %v572_v54 = vpop.xlane.xlu1 %571 }
 0x72d   :  { %v579_v55 = vadd.f32 1e-05, %v577_v53  ;;  %v576_v56 = vmul.f32 0.03125, %v572_v54 }
 0x72f   :  { %1331 = vrsqrt.f32 %v579_v55  ;;  %v578_v57 = vadd.f32 1e-05, %v576_v56 }
 0x731   :  { %1333 = vrsqrt.f32 %v578_v57  ;;  %v34_v57 = vld [vmem:[%s1592_s1 + $0xb8] sm:$0xff] }
 0x73c   :  { %v1332_v58 = vpop.eup %1331 }
 0x73d   :  { %v583_v60 = vmul.f32 %v1332_v58, %v567_v37  ;;  %v33_v58 = vld [vmem:[%s1592_s1 + $0xb0] sm:$0xff] }
 0x73e   :  { %v1334_v61 = vpop.eup %1333 }
 0x73f   :  { %v582_v62 = vmul.f32 %v1334_v61, %v566_v40  ;;  %v589_v63 = vmul.f32 %v1117_v59, %v583_v60 }
 0x741   :  { %v588_v4 = vmul.f32 %v1117_v59, %v582_v62  ;;  %v595_v6 = vadd.f32 %v1118_v3, %v589_v63  ;;  %v32_v62 = vld [vmem:[%s1592_s1 + $0xa8] sm:$0xff]  ;;  %v31_v63 = vld [vmem:[%s1592_s1 + $0xa0] sm:$0xff] }
 0x743   :  { %v594_v5 = vadd.f32 %v1118_v3, %v588_v4  ;;  %v1354_v3 = vmov 2  }
 0x745   :  { %1256 = vmatprep.mubr.msk.f32.mxu1 %vm163_vm7, %v594_v5 }
 0x746   :  { %1257 = vmatmul.mubr.msk.f32.vlgmr.msra.gmra.mxu1 %vm163_vm7, %v595_v6 }
 0x747   :  { %1282 = vmatprep.mubr.msk.f32.mxu1 %vm1352_vm12, %v1347_v23 }
 0x806   :  { %v1258_v10 = vpop.f32.mrf.mxu1 }
 0x807   :  { %v678_v13 = vmax.f32 %v1258_v10, 0.0  ;;  %v1128_v10 = vsel %vm975_vm14, 1.0, %v1347_v23 }
 0x808   :  { %v668_v11 = vpop.f32.mrf.mxu1 }
 0x809   :  { %v677_v12 = vmax.f32 %v668_v11, 0.0 }
 0x80b   :  { %1275 = vmatprep.mubr.msk.f32.mxu0 %vm679_vm11, %v677_v12  ;;  %v982_v12 = vmul.f32 %v1129_v9, %v1128_v10 }
 0x80c   :  { %1276 = vmatmul.mubr.msk.f32.vlgmr.msra.gmra.mxu0 %vm679_vm11, %v678_v13 }
 0x8cc   :  { %v1277_v14 = vpop.f32.mrf.mxu0 }
 0x8cd   :  { %v762_v15 = vadd.f32 %v1277_v14, %v595_v6 }
 0x8ce   :  { %v752_v16 = vpop.f32.mrf.mxu0 }
 0x8cf   :  { %v761_v17 = vadd.f32 %v752_v16, %v594_v5  ;;  %v766_v18 = vsel %vm163_vm7, %v762_v15, 0.0 }
 0x8d0   :  { %767 = vadd.xlane.f32.xlu1 %v766_v18 }
 0x8d1   :  { %v763_v19 = vsel %vm163_vm7, %v761_v17, 0.0 }
 0x8d2   :  { %764 = vadd.xlane.f32.xlu0 %v763_v19 }
 0x8e1   :  { %810 = vrot.lane.b32.xlu1 %v53_v21, %s1351_s21 }
 0x8e8   :  { %808 = vrot.lane.b32.xlu0 %v52_v22, %s1351_s21 }
 0x959   :  { %v768_v25 = vpop.xlane.xlu1 %767 }
 0x95a   :  { %v770_v26 = vmul.f32 0.03125, %v768_v25 }
 0x95b   :  { %v765_v27 = vpop.xlane.xlu0 %764 }
 0x95c   :  { %v772_v30 = vsub.f32 %v762_v15, %v770_v26  ;;  %v769_v1 = vmul.f32 0.03125, %v765_v27 }
 0x95d   :  { %v811_v31 = vpop.permute.xlu1 %810 }
 0x95e   :  { %v771_v32 = vsub.f32 %v761_v17, %v769_v1  ;;  %v774_v33 = vmul.f32 %v772_v30, %v772_v30  ;;  %1279 = vmatpush3.msra.mxu1 %v811_v31 }
 0x95f   :  { %1280 = vmatprep.subr.mxu1 %v1347_v23  ;;  %v809_v36 = vpop.permute.xlu0 %808 }
 0x960   :  { %v778_v37 = vsel %vm163_vm7, %v774_v33, 0.0  ;;  %v773_v39 = vmul.f32 %v771_v32, %v771_v32  ;;  %1281 = vmatpush3.msra.mxu1 %v809_v36 }
 0x961   :  { %779 = vadd.xlane.f32.xlu1 %v778_v37  ;;  %1283 = vmatmul.mubr.msk.f32.vlgmr.msra.gmra.mxu1 %vm364_vm10, %v1125_v34 }
 0x962   :  { %v775_v38 = vsel %vm163_vm7, %v773_v39, 0.0  ;;  %1285 = vmatprep.subr.mxu1 %v1347_v23  ;;  %1289 = vmatprep.mubr.msk.f32.mxu1 %vm1352_vm12, %v1347_v23 }
 0x963   :  { %776 = vadd.xlane.f32.xlu0 %v775_v38 }
 0x972   :  { %893 = vperm.xlu1 %1319, %v53_v21  }
 0x976   :  { %1321 = vset.pattern.permute.xlu1 %v1345_v0  ;;  %v1124_v0 = vld [vmem:[%s1592_s1 + $0xd8] ss:$0 sm:$0xff] }
 0x979   :  { %889 = vperm.xlu0 %1320, %v52_v22  }
 0x97d   :  { %1322 = vset.pattern.permute.xlu0 %v1354_v3 }
 0x97e   :  { %1057 = vperm.xlu0 %1322, %v1380_v2  }
 0x9ea   :  { %v780_v40 = vpop.xlane.xlu1 %779 }
 0x9eb   :  { %v782_v41 = vmul.f32 0.03125, %v780_v40 }
 0x9ec   :  { %v777_v42 = vpop.xlane.xlu0 %776 }
 0x9ed   :  { %v784_v43 = vadd.f32 1e-05, %v782_v41  ;;  %v781_v28 = vmul.f32 0.03125, %v777_v42  ;;  %v1132_v41 = vsel %vm1091_vm4, 1.0, %v1347_v23 }
 0x9ee   :  { %v894_v50 = vpop.permute.xlu1 %893 }
 0x9ef   :  { %1335 = vrsqrt.f32 %v784_v43  ;;  %v783_v29 = vadd.f32 1e-05, %v781_v28 }
 0x9f1   :  { %1337 = vrsqrt.f32 %v783_v29 }
 0x9f4   :  { %v890_v53 = vpop.permute.xlu0 %889 }
 0x9f9   :  { %v1058_v11 = vpop.permute.xlu0 %1057 }
 0x9fa   :  { %vm1059_vm15 = vcmp.eq.s32.totalorder %v1419_v20, %v1058_v11 }
 0x9fb   :  { %v1131_v13 = vsel %vm1059_vm15, 1.0, %v1347_v23 }
 0x9fc   :  { %v1336_v44 = vpop.eup %1335 }
 0x9fd   :  { %v788_v46 = vmul.f32 %v1336_v44, %v772_v30 }
 0x9fe   :  { %v1338_v47 = vpop.eup %1337 }
 0x9ff   :  { %v794_v48 = vmul.f32 %v1123_v45, %v788_v46  ;;  %v787_v49 = vmul.f32 %v1338_v47, %v771_v32 }
 0xa01   :  { %v800_v51 = vadd.f32 %v1124_v0, %v794_v48  ;;  %v793_v52 = vmul.f32 %v1123_v45, %v787_v49 }
 0xa03   :  { %v897_v54 = vmul.f32 %v894_v50, %v800_v51  ;;  %v799_v55 = vadd.f32 %v1124_v0, %v793_v52 }
 0xa05   :  { %v896_v56 = vmul.f32 %v890_v53, %v799_v55  ;;  %1286 = vmatpush3.msra.mxu1 %v897_v54 }
 0xa06   :  { %1287 = vmatprep.subr.mxu1 %v1347_v23 }
 0xa07   :  { %1288 = vmatpush3.msra.mxu1 %v896_v56 }
 0xa08   :  { %1290 = vmatmul.mubr.msk.f32.vlgmr.msra.gmra.mxu1 %vm364_vm10, %v1125_v34  ;;  %1292 = vmatprep.subr.mxu1 %v1347_v23 }
 0xa09   :  { %1300 = vmatprep.mubr.msk.f32.mxu1 %vm1352_vm12, %v1347_v23  ;;  %1293 = vmatpush3.msra.mxu1 %v34_v57 }
 0xa0a   :  { %1294 = vmatprep.subr.mxu1 %v1347_v23 }
 0xa0b   :  { %1295 = vmatpush3.msra.mxu1 %v33_v58 }
 0xa0c   :  { %1296 = vmatprep.subr.mxu1 %v1347_v23 }
 0xa0d   :  { %1297 = vmatpush3.msra.mxu1 %v32_v62 }
 0xa0e   :  { %1298 = vmatprep.subr.mxu1 %v1347_v23 }
 0xa0f   :  { %1299 = vmatpush3.msra.mxu1 %v31_v63 }
 0xa21   :  { %v883_v59 = vpop.f32.mrf.mxu1 }
 0xa22   :  { %v887_v60 = vmax.f32 %v883_v59, 1.0 }
 0xa23   :  { %v1284_v61 = vpop.f32.mrf.mxu1 }
 0xa24   :  { %970 = vperm.xlu1 %1321, %v887_v60  }
 0xa9f   :  { %v971_v4 = vpop.permute.xlu1 %970 }
 0xaa0   :  { %1339 = vrcp.f32 %v971_v4 }
 0xaad   :  { %v1340_v5 = vpop.eup %1339 }
 0xac8   :  { %v964_v6 = vpop.f32.mrf.mxu1 }
 0xac9   :  { %v974_v7 = vmul.f32 %v1340_v5, %v964_v6 }
 0xaca   :  { %v1291_v8 = vpop.f32.mrf.mxu1 }
 0xacb   :  { %1301 = vmatmul.mubr.msk.f32.vlgmr.msra.gmra.mxu1 %vm163_vm7, %v974_v7 }
 0xb8b   :  { %v1052_v2 = vpop.f32.mrf.mxu1 }
 0xb8c   :  { %v1053_v14 = vadd.f32 %v1052_v2, %v982_v12 }
 0xb8d   :  { %v1302_v15 = vpop.f32.mrf.mxu1 }
 0xb8e   :  { %v1063_v16 = vsel %vm1062_vm0, %v1053_v14, -inf  ;;  %v1075_v17 = vmul.f32 %v1131_v13, %v1053_v14 }
 0xb8f   :  { %1064 = vmax.xlane.f32.xlu1 %v1063_v16 }
 0xb90   :  { %v1076_v18 = vsel %vm1062_vm0, %v1075_v17, 0.0 }
 0xb93   :  { %1077 = vadd.xlane.f32.xlu1 %v1076_v18 }
 0xc18   :  { %v1065_v19 = vpop.xlane.xlu1 %1064 }
 0xc19   :  { %v1066_v21 = vsub.f32 %v1053_v14, %v1065_v19 }
 0xc1b   :  { %v1067_v22 = vmul.f32 1.442695, %v1066_v21 }
 0xc1c   :  { %v1078_v31 = vpop.xlane.xlu1 %1077 }
 0xc1d   :  { %1341 = vpow2.f32 %v1067_v22 }
 0xc2a   :  { %v1342_v24 = vpop.eup %1341 }
 0xc2b   :  { %v1069_v25 = vsel %vm1062_vm0, %v1342_v24, 0.0 }
 0xc2c   :  { %1070 = vadd.xlane.f32.xlu0 %v1069_v25 }
 0xcb5   :  { %v1071_v26 = vpop.xlane.xlu0 %1070 }
 0xcb6   :  { %1343 = vlog2.f32 %v1071_v26 }
 0xcc3   :  { %v1344_v27 = vpop.eup %1343 }
 0xcc4   :  { %v1073_v30 = vmul.f32 0.6931472, %v1344_v27 }
 0xcc6   :  { %v1074_v1 = vadd.f32 %v1073_v30, %v1065_v19 }
 0xcc8   :  { %v1079_v32 = vsub.f32 %v1074_v1, %v1078_v31 }
 0xcca   :  { %v1081_v33 = vsel %vm1080_vm1, %v1079_v32, 0.0 }
 0xccb   :  { %v1082_v34 = vrot.slane %v1081_v33, 4 }
 0xccd   :  { %v1083_v36 = vadd.f32 %v1082_v34, %v1081_v33 }
 0xccf   :  { %v1084_v37 = vrot.slane %v1083_v36, 2 }
 0xcd1   :  { %v1085_v39 = vadd.f32 %v1084_v37, %v1083_v36 }
 0xcd3   :  { %v1086_v38 = vrot.slane %v1085_v39, 1 }
 0xcd5   :  { %v1087_v40 = vadd.f32 %v1086_v38, %v1085_v39 }
 0xcd7   :  { %v1088_v42 = vmul.f32 0.5, %v1087_v40 }
 0xcd9   :  { %v1094_v43 = vmul.f32 %v1132_v41, %v1088_v42 }
 0xcdb   :  { %v1095_v28 = vadd.f32 %v1094_v43, %v1053_v14 }
 0xcdd   :  { %1096 = vst [vmem:[%s1593_s2] sm:$0xff] %v1095_v28 }

</bundles_post_ra>
